<compile_context>
chip_gen: v7x
topology: tpu7x:2x2x1
jax: 0.10.0
libtpu: 0.0.40
codegen_flags: <defaults>
</compile_context>

<pallas_src>
import functools
import numpy as np
import jax
import jax.numpy as jnp
from jax.experimental import pallas as pl
from jax.experimental.pallas import tpu as pltpu

# ---------------- configuration (small synthetic sizes) ----------------
B = 2      # batch
T = 8      # sequence length (multiple of 8 -> per-batch slices stay sublane-aligned)
D = 32     # input_size
P = 32     # projection_size
C = 128    # num_classes (multiple of 128 -> lane-dense output)


# ---------------- Pallas kernel: whole forward, one invocation ----------
def laat_kernel(seq_len, num_batches, d, p, c, w2_row,
                x_ref, w_ref, out_ref):
    """x_ref: (B*T, D); w_ref: packed weight slab (see pack_weights); out: (B, C)."""
    x = x_ref[...]                                      # (B*T, D)
    w_cat = w_ref[0:d, :]                               # (D, C+P) = [W3^T | W1^T]
    b3 = w_ref[d:d + 1, 0:c]                            # (1, C)   exact f32 bias
    w2t = w_ref[w2_row:w2_row + p, 0:c]                 # (P, C)   = W2^T

    # One fused MXU matmul covers both projections that share LHS x.
    yz = jnp.dot(x, w_cat, preferred_element_type=jnp.float32)    # (B*T, C+P)
    y = yz[:, 0:c]                                      # (B*T, C) = x @ W3^T
    z = jnp.tanh(yz[:, c:c + p])                        # (B*T, P)
    att = jnp.dot(z, w2t, preferred_element_type=jnp.float32)     # (B*T, C)

    for b in range(num_batches):          # static unroll, B is tiny
        lo = b * seq_len                  # sublane-aligned static slices (T % 8 == 0)
        a = att[lo:lo + seq_len, :]       # (T, C)
        yb = y[lo:lo + seq_len, :]        # (T, C)
        # exact softmax over the sequence axis (axis 0 of the per-batch slice)
        m = jnp.max(a, axis=0, keepdims=True)
        e = jnp.exp(a - m)
        sm = e / jnp.sum(e, axis=0, keepdims=True)
        # out[b, :] = sum_t softmax[t, :] * (x @ W3^T)[t, :] + bias  (direct row store)
        out_ref[b:b + 1, :] = jnp.sum(sm * yb, axis=0, keepdims=True) + b3


# ---------------- wrapper ------------------------------------------------
def pack_weights(w1, w2, w3, b3):
    """Pack every parameter into one f32 slab (free wrapper-side layout plumbing).

    Row layout (rows = sublanes, cols = lanes):
      rows [0, D)          : [ W3^T | W1^T ]   (D, C+P)
      row  D               : [ b3   | 0    ]   (1, C+P)
      rows [D+1, rows_top) : zero pad up to a multiple of 8 rows
      rows [rows_top, +P)  : [ W2^T | 0    ]   (P, C+P)
    """
    p_dim, d = w1.shape
    c = w2.shape[0]
    w_cat = jnp.concatenate([w3.T, w1.T], axis=1)                        # (D, C+P)
    b3_row = jnp.concatenate([b3.reshape(1, c),
                              jnp.zeros((1, p_dim), b3.dtype)], axis=1)  # (1, C+P)
    top = jnp.concatenate([w_cat, b3_row], axis=0)                       # (D+1, C+P)
    rows_top = ((d + 1 + 7) // 8) * 8                                    # sublane align
    top = jnp.pad(top, ((0, rows_top - (d + 1)), (0, 0)))
    w2_block = jnp.pad(w2.T, ((0, 0), (0, p_dim)))                       # (P, C+P)
    slab = jnp.concatenate([top, w2_block], axis=0)                      # (rows_top+P, C+P)
    return slab, rows_top


def label_attention(x, w1, w2, w3, b3):
    """x: (B,T,D) f32; w1: (P,D); w2: (C,P); w3: (C,D); b3: (C,). Returns (B,C)."""
    bsz, seq_len, d = x.shape
    p_dim = w1.shape[0]
    c = w2.shape[0]
    assert seq_len % 8 == 0, "pad T to a multiple of 8 (f32 sublane) before calling"
    xf = x.reshape(bsz * seq_len, d)               # free wrapper-side plumbing
    slab, w2_row = pack_weights(w1, w2, w3, b3)    # single weight operand -> 2 DMAs total
    vmem = lambda: pl.BlockSpec(memory_space=pltpu.MemorySpace.VMEM)
    return pl.pallas_call(
        functools.partial(laat_kernel, seq_len, bsz, d, p_dim, c, w2_row),
        out_shape=jax.ShapeDtypeStruct((bsz, c), jnp.float32),
        in_specs=[vmem(), vmem()],
        out_specs=vmem(),
    )(xf, slab)


# ---------------- pure-JAX reference (mirrors the PyTorch forward) -------
# Default matmul precision, matching the kernel (change both together).
def ref_label_attention(x, w1, w2, w3, b3):
    weights = jnp.tanh(jnp.einsum("btd,pd->btp", x, w1))
    att = jnp.einsum("btp,cp->btc", weights, w2)
    att = jax.nn.softmax(att, axis=1)              # softmax over seq dim
    att_t = jnp.swapaxes(att, 1, 2)                # (B, C, T)
    wo = jnp.einsum("bct,btd->bcd", att_t, x)
    return jnp.sum(w3[None, :, :] * wo, axis=-1) + b3[None, :]


# ---------------------------------- main --------------------------------
if __name__ == "__main__":
    key = jax.random.PRNGKey(0)
    kx, k1, k2, k3, k4 = jax.random.split(key, 5)
    std = 0.03
    x = jax.random.normal(kx, (B, T, D), jnp.float32)
    w1 = std * jax.random.normal(k1, (P, D), jnp.float32)   # first_linear.weight
    w2 = std * jax.random.normal(k2, (C, P), jnp.float32)   # second_linear.weight
    w3 = std * jax.random.normal(k3, (C, D), jnp.float32)   # third_linear.weight
    b3 = std * jax.random.normal(k4, (C,), jnp.float32)     # third_linear.bias

    out = label_attention(x, w1, w2, w3, b3)
    out = jax.block_until_ready(out)

    ref = ref_label_attention(x, w1, w2, w3, b3)
    # Exact softmax + matched matmul precision: differences are only from
    # re-association rounding, well inside this tolerance.
    np.testing.assert_allclose(np.asarray(out), np.asarray(ref),
                               rtol=1e-3, atol=1e-3)
    print("KERNEL_OK")
</pallas_src>

<mosaic_0001>
module attributes {stable_mosaic.version = 11 : i64} {
  func.func @laat_kernel(%arg0: memref<16x32xf32, #tpu.memory_space<vmem>>, %arg1: memref<72x160xf32, #tpu.memory_space<vmem>>, %arg2: memref<2x128xf32, #tpu.memory_space<vmem>>) attributes {dimension_semantics = [], scalar_prefetch = 0 : i64, scratch_operands = 0 : i64, tpu.core_type = #tpu.core_type<tc>} {
    %c0 = arith.constant 0 : index
    %c0_0 = arith.constant 0 : index
    %0 = vector.load %arg0[%c0, %c0_0] : memref<16x32xf32, #tpu.memory_space<vmem>>, vector<16x32xf32>
    %c0_1 = arith.constant 0 : index
    %c0_2 = arith.constant 0 : index
    %1 = vector.load %arg1[%c0_1, %c0_2] : memref<72x160xf32, #tpu.memory_space<vmem>>, vector<32x160xf32>
    %c32 = arith.constant 32 : index
    %c0_3 = arith.constant 0 : index
    %2 = vector.load %arg1[%c32, %c0_3] : memref<72x160xf32, #tpu.memory_space<vmem>>, vector<1x128xf32>
    %c40 = arith.constant 40 : index
    %c0_4 = arith.constant 0 : index
    %3 = vector.load %arg1[%c40, %c0_4] : memref<72x160xf32, #tpu.memory_space<vmem>>, vector<32x128xf32>
    %cst = arith.constant dense<0.000000e+00> : vector<16x160xf32>
    %4 = tpu.matmul %0, %1, %cst {dimension_numbers = #tpu.dot_dimension_numbers<[1], [0], [0], [1], [0, 0, 1, 1], [], []>} : vector<16x32xf32>, vector<32x160xf32>, vector<16x160xf32> -> vector<16x160xf32>
    %5 = vector.extract_strided_slice %4 {offsets = [0, 0], sizes = [16, 128], strides = [1, 1]} : vector<16x160xf32> to vector<16x128xf32>
    %6 = vector.extract_strided_slice %4 {offsets = [0, 128], sizes = [16, 32], strides = [1, 1]} : vector<16x160xf32> to vector<16x32xf32>
    %7 = math.tanh %6 : vector<16x32xf32>
    %cst_5 = arith.constant dense<0.000000e+00> : vector<16x128xf32>
    %8 = tpu.matmul %7, %3, %cst_5 {dimension_numbers = #tpu.dot_dimension_numbers<[1], [0], [0], [1], [0, 0, 1, 1], [], []>} : vector<16x32xf32>, vector<32x128xf32>, vector<16x128xf32> -> vector<16x128xf32>
    %9 = vector.extract_strided_slice %8 {offsets = [0, 0], sizes = [8, 128], strides = [1, 1]} : vector<16x128xf32> to vector<8x128xf32>
    %10 = vector.extract_strided_slice %5 {offsets = [0, 0], sizes = [8, 128], strides = [1, 1]} : vector<16x128xf32> to vector<8x128xf32>
    %cst_6 = arith.constant dense<0xFF800000> : vector<128xf32>
    %11 = vector.multi_reduction <maximumf>, %9, %cst_6 [0] : vector<8x128xf32> to vector<128xf32>
    %12 = vector.shape_cast %11 : vector<128xf32> to vector<1x128xf32>
    %13 = vector.broadcast %12 : vector<1x128xf32> to vector<8x128xf32>
    %14 = arith.subf %9, %13 : vector<8x128xf32>
    %15 = math.exp %14 : vector<8x128xf32>
    %cst_7 = arith.constant dense<0.000000e+00> : vector<128xf32>
    %16 = vector.multi_reduction <add>, %15, %cst_7 [0] : vector<8x128xf32> to vector<128xf32>
    %17 = vector.shape_cast %16 : vector<128xf32> to vector<1x128xf32>
    %18 = vector.broadcast %17 : vector<1x128xf32> to vector<8x128xf32>
    %19 = arith.divf %15, %18 : vector<8x128xf32>
    %20 = arith.mulf %19, %10 : vector<8x128xf32>
    %cst_8 = arith.constant dense<0.000000e+00> : vector<128xf32>
    %21 = vector.multi_reduction <add>, %20, %cst_8 [0] : vector<8x128xf32> to vector<128xf32>
    %22 = vector.shape_cast %21 : vector<128xf32> to vector<1x128xf32>
    %23 = arith.addf %22, %2 : vector<1x128xf32>
    %c0_9 = arith.constant 0 : index
    %c0_10 = arith.constant 0 : index
    %24 = vector.load %arg2[%c0_9, %c0_10] : memref<2x128xf32, #tpu.memory_space<vmem>>, vector<1x128xf32>
    tpu.vector_store %arg2[%c0_9, %c0_10], %23 {strides = array<i32>} : memref<2x128xf32, #tpu.memory_space<vmem>>, vector<1x128xf32>,
    %25 = vector.extract_strided_slice %8 {offsets = [8, 0], sizes = [8, 128], strides = [1, 1]} : vector<16x128xf32> to vector<8x128xf32>
    %26 = vector.extract_strided_slice %5 {offsets = [8, 0], sizes = [8, 128], strides = [1, 1]} : vector<16x128xf32> to vector<8x128xf32>
    %cst_11 = arith.constant dense<0xFF800000> : vector<128xf32>
    %27 = vector.multi_reduction <maximumf>, %25, %cst_11 [0] : vector<8x128xf32> to vector<128xf32>
    %28 = vector.shape_cast %27 : vector<128xf32> to vector<1x128xf32>
    %29 = vector.broadcast %28 : vector<1x128xf32> to vector<8x128xf32>
    %30 = arith.subf %25, %29 : vector<8x128xf32>
    %31 = math.exp %30 : vector<8x128xf32>
    %cst_12 = arith.constant dense<0.000000e+00> : vector<128xf32>
    %32 = vector.multi_reduction <add>, %31, %cst_12 [0] : vector<8x128xf32> to vector<128xf32>
    %33 = vector.shape_cast %32 : vector<128xf32> to vector<1x128xf32>
    %34 = vector.broadcast %33 : vector<1x128xf32> to vector<8x128xf32>
    %35 = arith.divf %31, %34 : vector<8x128xf32>
    %36 = arith.mulf %35, %26 : vector<8x128xf32>
    %cst_13 = arith.constant dense<0.000000e+00> : vector<128xf32>
    %37 = vector.multi_reduction <add>, %36, %cst_13 [0] : vector<8x128xf32> to vector<128xf32>
    %38 = vector.shape_cast %37 : vector<128xf32> to vector<1x128xf32>
    %39 = arith.addf %38, %2 : vector<1x128xf32>
    %c1 = arith.constant 1 : index
    %c0_14 = arith.constant 0 : index
    %40 = vector.load %arg2[%c1, %c0_14] : memref<2x128xf32, #tpu.memory_space<vmem>>, vector<1x128xf32>
    tpu.vector_store %arg2[%c1, %c0_14], %39 {strides = array<i32>} : memref<2x128xf32, #tpu.memory_space<vmem>>, vector<1x128xf32>,
    return
  }
}

</mosaic_0001>

<bundles_post_ra>
// kernel: tpu_custom_call.1
= control target key start
LH: loop header
LB: loop body
LE: loop exit
PB: predicated region body
PF: predicated region fallthrough
CT: control target
= control target key end

     0   :  { %7 = vsyncpa [#allocation3], 0  ;;  %s482_s0 = inlined_call_operand.hbm [shape: f32[16,32], index: 0, kind: input, shape index: {}]   ;;  %s483_s1 = inlined_call_operand.hbm [shape: f32[72,160], index: 1, kind: input, shape index: {}]   ;;  %s484_s2 = inlined_call_operand.hbm [shape: f32[2,128], index: 2, kind: output, shape index: {}]  }
   0x1   :  { %8 = vsyncpa [#allocation6], 0 }
   0x2   :  { %9 = vsyncpa [#allocation4], 0  ;;  %s419_s9 = smov [#allocation2]   ;;  %s347_s13 = scalar_lea.hbm %s482_s0, 256 }
   0x3   :  { %s15_s10 = sshll.u32 %s419_s9, 4  ;;  %p348_p0 = scmp.ne.s32.totalorder %s482_s0, %s347_s13  ;;  %s16_s10 = int_to_ptr.vmem [resolvable:$true] %s15_s10 }
   0x4   :  { %p351_p1 = scmp.lt.u32.totalorder %s347_s13, %s482_s0 }
   0x6   :  { %p353_p2 = pnand %p351_p1, %p348_p0 }
   0x8   :  { %356 = shalt.err (!%p353_p2)
}
   0x9   :  { %s357_s18 = scalar_lea.vmem %s16_s10, 256  ;;  %p362_p4 = scmp.lt.s32.totalorder %s16_s10, %s16_s10 }
   0xa   :  { %p358_p3 = scmp.ne.s32.totalorder %s16_s10, %s357_s18  ;;  %p363_p5 = scmp.lt.s32.totalorder %s357_s18, %s357_s18 }
   0xc   :  { %p364_p6 = por %p363_p5, %p362_p4 }
   0xe   :  { %p365_p7 = pnand %p364_p6, %p358_p3 }
  0x10   :  { %368 = shalt.err (!%p365_p7)
}
  0x11   :  { %s420_s19 = smov 128   ;;  %s421_s20 = smov 8  }
  0x12   :  { %21 = dma.hbm_to_vmem [thread:$0]  %s482_s0, 256, %s16_s10, [#allocation3], %s420_s19, %s420_s19, %s421_s20  }
  0x13   :  { %s422_s23 = smov [#allocation5]   ;;  %s369_s27 = scalar_lea.hbm %s483_s1, 2304 }
  0x14   :  { %s27_s24 = sshll.u32 %s422_s23, 4  ;;  %p370_p8 = scmp.ne.s32.totalorder %s483_s1, %s369_s27  ;;  %s28_s24 = int_to_ptr.vmem [resolvable:$true] %s27_s24 }
  0x15   :  { %p373_p9 = scmp.lt.u32.totalorder %s369_s27, %s483_s1 }
  0x17   :  { %p375_p10 = pnand %p373_p9, %p370_p8 }
  0x19   :  { %378 = shalt.err (!%p375_p10)
}
  0x1a   :  { %s379_s4 = scalar_lea.vmem %s28_s24, 2304  ;;  %p384_p12 = scmp.lt.s32.totalorder %s28_s24, %s28_s24 }
  0x1b   :  { %p380_p11 = scmp.ne.s32.totalorder %s28_s24, %s379_s4  ;;  %p385_p13 = scmp.lt.s32.totalorder %s379_s4, %s379_s4 }
  0x1d   :  { %p386_p0 = por %p385_p13, %p384_p12 }
  0x1f   :  { %p387_p1 = pnand %p386_p0, %p380_p11 }
  0x21   :  { %390 = shalt.err (!%p387_p1)
}
  0x22   :  { %s423_s0 = smov 256   ;;  %s424_s5 = smov 16  }
  0x23   :  { %33 = dma.hbm_to_vmem [thread:$0]  %s483_s1, 2304, %s28_s24, [#allocation6], %s423_s0, %s423_s0, %s424_s5  }
  0x24   :  { %413 = dma.done.wait [#allocation3], 256  }
  0x25   :  { %414 = vsyncadd [#allocation3], 4294967040 }
  0x26   :  { %415 = dma.done.wait [#allocation6], 2304  }
  0x27   :  { %416 = vsyncadd [#allocation6], 4294964992  ;;  %v425_v0 = vmov 0.0   ;;  %v43_v1 = vld [vmem:[#allocation5 + $0x8] sm:$0xff]  ;;  %v45_v2 = vld [vmem:[#allocation5 + $0x18] sm:$0xff]  ;;  %vm55_vm0 = vcmask 261120  }
  0x28   :  { %126 = vmatprep.mubr.f32.mxu0 %v425_v0  ;;  %v42_v3 = vld [vmem:[#allocation5] sm:$0xff]  ;;  %v311_v4 = vpack.c.bf16 %v45_v2, %v43_v1  ;;  %v44_v5 = vld [vmem:[#allocation5 + $0x10] sm:$0xff]  ;;  %v47_v6 = vld [vmem:[#allocation5 + $0x28] sm:$0xff]  ;;  %s426_s1 = smov [#allocation7]  }
  0x29   :  { %v49_v7 = vld [vmem:[#allocation5 + $0x38] sm:$0xff]  ;;  %v313_v8 = vpack.c.bf16 %v44_v5, %v42_v3  ;;  %v46_v10 = vld [vmem:[#allocation5 + $0x20] sm:$0xff]  ;;  %v48_v11 = vld [vmem:[#allocation5 + $0x30] sm:$0xff]  ;;  %s280_s8 = sshll.u32 %s426_s1, 4  ;;  %s281_s8 = int_to_ptr.vmem [resolvable:$true] %s280_s8 }
  0x2a   :  { %v315_v9 = vpack.c.bf16 %v49_v7, %v47_v6  ;;  %312 = vmatprep.subr.bf16.mxu0 %v311_v4  ;;  %v317_v12 = vpack.c.bf16 %v48_v11, %v46_v10  ;;  %v40_v13 = vld [vmem:[#allocation2] sm:$0xff]  ;;  %v41_v14 = vld [vmem:[#allocation2 + $0x8] sm:$0xff]  ;;  %v52_v16 = vld [vmem:[#allocation5 + $0x60] sm:$0xff]  ;;  %s391_s9 = scalar_lea.vmem %s281_s8, 32  ;;  %p396_p3 = scmp.lt.s32.totalorder %s281_s8, %s281_s8 }
  0x2b   :  { %314 = vmatpush1.bf16.msra.mxu0 %v313_v8  ;;  %v51_v15 = vld [vmem:[#allocation5 + $0x50] sm:$0xff]  ;;  %v54_v19 = vld [vmem:[#allocation5 + $0x80] sm:$0xff]  ;;  %p392_p2 = scmp.ne.s32.totalorder %s281_s8, %s391_s9  ;;  %p397_p4 = scmp.lt.s32.totalorder %s391_s9, %s391_s9 }
  0x2c   :  { %316 = vmatprep.subr.bf16.mxu0 %v315_v9  ;;  %v53_v17 = vld [vmem:[#allocation5 + $0x70] sm:$0xff]  ;;  %v319_v18 = vpack.c.bf16 %v52_v16, %v51_v15  ;;  %v50_v10 = vld [vmem:[#allocation5 + $0x40] ss:$0 sm:$0xff] }
  0x2d   :  { %v323_v20 = vpack.c.bf16 %v54_v19, %v53_v17  ;;  %p398_p5 = por %p397_p4, %p396_p3 }
  0x2e   :  { %320 = vmatprep.subr.bf16.mxu1 %v319_v18 }
  0x2f   :  { %318 = vmatpush1.bf16.msra.mxu0 %v317_v12  ;;  %322 = vmatpush3.bf16.msra.mxu1 %v319_v18  ;;  %p399_p6 = pnand %p398_p5, %p392_p2 }
  0x30   :  { %324 = vmatprep.subr.bf16.mxu1 %v323_v20 }
  0x32   :  { %290 = vmatmul.mubr.msk.f32.vlgmr.msra.gmra.mrb[0].mxu0 %vm55_vm0, %v40_v13 }
  0x33   :  { %132 = vmatprep.mubr.f32.mxu0 %v425_v0  ;;  %326 = vmatpush3.bf16.msra.mxu1 %v323_v20 }
  0x36   :  { %291 = vmatmul.mubr.msk.f32.gmra.mrb[2].mxu0 %vm55_vm0, %v41_v14 }
 0x105   :  { %v128_v21 = vpop.f32.mrb[0].mxu0 }
 0x106   :  { %v130_v22 = vpop.f32.mrb[1].mxu0 }
 0x107   :  { %335 = vtanh.f32 %v130_v22 }
 0x109   :  { %v134_v23 = vpop.f32.mrb[2].mxu0 }
 0x10a   :  { %v136_v24 = vpop.f32.mrb[3].mxu0 }
 0x10b   :  { %337 = vtanh.f32 %v136_v24 }
 0x111   :  { %v336_v25 = vpop.eup %335 }
 0x112   :  { %308 = vmatprep.mubr.msk.f32.mxu1 %vm55_vm0, %v336_v25 }
 0x115   :  { %v338_v26 = vpop.eup %337 }
 0x116   :  { %309 = vmatmul.mubr.msk.f32.vlgmr.msra.gmra.mrb[0].mxu1 %vm55_vm0, %v338_v26 }
 0x1e9   :  { %v310_v27 = vpop.f32.mrb[0].mxu1 }
 0x1ea   :  { %v248_v28 = vrot.slane %v310_v27, 4  ;;  %v213_v29 = vpop.f32.mrb[1].mxu1 }
 0x1eb   :  { %v222_v30 = vrot.slane %v213_v29, 4 }
 0x1ec   :  { %v249_v31 = vmax.f32 %v310_v27, %v248_v28 }
 0x1ed   :  { %v223_v32 = vmax.f32 %v213_v29, %v222_v30 }
 0x1ee   :  { %v250_v33 = vrot.slane %v249_v31, 2 }
 0x1ef   :  { %v224_v34 = vrot.slane %v223_v32, 2 }
 0x1f0   :  { %v251_v35 = vmax.f32 %v249_v31, %v250_v33 }
 0x1f1   :  { %v225_v36 = vmax.f32 %v223_v32, %v224_v34 }
 0x1f2   :  { %v252_v37 = vrot.slane %v251_v35, 1 }
 0x1f3   :  { %v226_v38 = vrot.slane %v225_v36, 1 }
 0x1f4   :  { %v253_v39 = vmax.f32 %v251_v35, %v252_v37 }
 0x1f5   :  { %v227_v40 = vmax.f32 %v225_v36, %v226_v38 }
 0x1f6   :  { %v254_v41 = vsub.f32 %v310_v27, %v253_v39 }
 0x1f7   :  { %v228_v42 = vsub.f32 %v213_v29, %v227_v40 }
 0x1f8   :  { %v255_v43 = vmul.f32 1.442695, %v254_v41 }
 0x1f9   :  { %v229_v44 = vmul.f32 1.442695, %v228_v42 }
 0x1fa   :  { %339 = vpow2.f32 %v255_v43 }
 0x1fb   :  { %341 = vpow2.f32 %v229_v44 }
 0x204   :  { %v340_v45 = vpop.eup %339 }
 0x205   :  { %v342_v46 = vpop.eup %341  ;;  %v257_v47 = vrot.slane %v340_v45, 4 }
 0x206   :  { %v231_v48 = vrot.slane %v342_v46, 4 }
 0x207   :  { %v258_v49 = vadd.f32 %v340_v45, %v257_v47 }
 0x208   :  { %v232_v50 = vadd.f32 %v342_v46, %v231_v48 }
 0x209   :  { %v259_v51 = vrot.slane %v258_v49, 2 }
 0x20a   :  { %v233_v52 = vrot.slane %v232_v50, 2 }
 0x20b   :  { %v260_v53 = vadd.f32 %v259_v51, %v258_v49 }
 0x20c   :  { %v234_v54 = vadd.f32 %v233_v52, %v232_v50 }
 0x20d   :  { %v261_v55 = vrot.slane %v260_v53, 1 }
 0x20e   :  { %v235_v56 = vrot.slane %v234_v54, 1 }
 0x20f   :  { %v262_v57 = vadd.f32 %v261_v55, %v260_v53 }
 0x210   :  { %v236_v58 = vadd.f32 %v235_v56, %v234_v54 }
 0x211   :  { %343 = vrcp.f32 %v262_v57 }
 0x212   :  { %345 = vrcp.f32 %v236_v58 }
 0x21b   :  { %v344_v59 = vpop.eup %343 }
 0x21c   :  { %v346_v60 = vpop.eup %345  ;;  %v264_v61 = vmul.f32 %v344_v59, %v340_v45 }
 0x21d   :  { %v238_v62 = vmul.f32 %v346_v60, %v342_v46 }
 0x21e   :  { %v265_v63 = vmul.f32 %v264_v61, %v134_v23 }
 0x21f   :  { %v239_v0 = vmul.f32 %v238_v62, %v128_v21 }
 0x220   :  { %v266_v1 = vrot.slane %v265_v63, 4 }
 0x221   :  { %v240_v2 = vrot.slane %v239_v0, 4 }
 0x222   :  { %v267_v3 = vadd.f32 %v266_v1, %v265_v63 }
 0x223   :  { %v241_v4 = vadd.f32 %v240_v2, %v239_v0 }
 0x224   :  { %v268_v5 = vrot.slane %v267_v3, 2 }
 0x225   :  { %v242_v6 = vrot.slane %v241_v4, 2 }
 0x226   :  { %v269_v7 = vadd.f32 %v268_v5, %v267_v3 }
 0x227   :  { %v243_v8 = vadd.f32 %v242_v6, %v241_v4 }
 0x228   :  { %v270_v9 = vrot.slane %v269_v7, 1 }
 0x229   :  { %v244_v11 = vrot.slane %v243_v8, 1 }
 0x22a   :  { %v271_v12 = vadd.f32 %v270_v9, %v269_v7 }
 0x22b   :  { %v245_v13 = vadd.f32 %v244_v11, %v243_v8 }
 0x22c   :  { %v272_v14 = vadd.f32 %v271_v12, %v50_v10 }
 0x22d   :  { %v246_v15 = vadd.f32 %v245_v13, %v50_v10 }
 0x22e   :  { %273 = vst [vmem:[#allocation7 + $0x1] sm:$0x1] %v272_v14 }
 0x22f   :  { %247 = vst [vmem:[#allocation7] sm:$0x1] %v246_v15 }
 0x230   :  { %402 = shalt.err (!%p399_p6)
}
 0x231   :  { %s403_s12 = scalar_lea.hbm %s484_s2, 32 }
 0x232   :  { %p404_p7 = scmp.ne.s32.totalorder %s484_s2, %s403_s12  ;;  %p407_p8 = scmp.lt.u32.totalorder %s403_s12, %s484_s2 }
 0x234   :  { %p409_p9 = pnand %p407_p8, %p404_p7 }
 0x236   :  { %412 = shalt.err (!%p409_p9)
}
 0x237   :  { %283 = dma.vmem_to_hbm [thread:$0]  %s281_s8, 32, %s484_s2, [#allocation4]  }
 0x238   :  { %417 = dma.done.wait [#allocation4], 32  }
 0x239   :  { %418 = vsyncadd [#allocation4], 4294967264 }
 0x23a   :  { %287 = vsyncpa [#allocation3], 1 }
 0x23b   :  { %288 = vsyncpa [#allocation6], 1 }
 0x23c   :  { %289 = vsyncpa [#allocation4], 1 }

</bundles_post_ra>
